<compile_context>
chip_gen: v6e
topology: v6e:2x2x1
jax: 0.10.0
libtpu: 0.0.40
codegen_flags: <defaults>
</compile_context>

<pallas_src>
import functools

import jax
import jax.numpy as jnp
from jax.experimental import pallas as pl
from jax.experimental.pallas import tpu as pltpu


def _round_up(x, m):
    return ((x + m - 1) // m) * m


def _pad2d(x, rows, cols):
    return jnp.pad(x, ((0, rows - x.shape[0]), (0, cols - x.shape[1])))


def _matmul_bias_act_kernel(a_ref, b_ref, bias_ref, o_ref, acc_ref, *,
                            activation, n_valid_cols):
    """out_tile = act( sum_k a_tile[k] @ b_panel[k] + bias ), f32 accumulation."""
    k = pl.program_id(1)

    @pl.when(k == 0)
    def _():
        acc_ref[...] = jnp.zeros_like(acc_ref)

    acc_ref[...] += jnp.dot(a_ref[...], b_ref[...],
                            preferred_element_type=jnp.float32)

    @pl.when(k == pl.num_programs(1) - 1)
    def _():
        z = acc_ref[...] + bias_ref[...]          # bias only in finalize, off k-loop path
        if activation == "relu":
            z = jnp.maximum(z, 0.0)
        elif activation == "log_softmax":
            # masked log-softmax over the first n_valid_cols lanes (rest is zero padding)
            col = jax.lax.broadcasted_iota(jnp.int32, z.shape, 1)
            valid = col < n_valid_cols
            zm = jnp.where(valid, z, -jnp.inf)
            m = jnp.max(zm, axis=1, keepdims=True)
            s = zm - m
            lse = jnp.log(jnp.sum(jnp.where(valid, jnp.exp(s), 0.0),
                                  axis=1, keepdims=True))
            z = s - lse
        o_ref[...] = z.astype(o_ref.dtype)


def _tiled_matmul(a, b, bias, *, out_dtype, activation="none",
                  n_valid_cols=None, tm=128, tk=128):
    """(M, K) @ (K, N) + bias(1, N); rows tiled (parallel), K tiled (reduction, last)."""
    m, k_dim = a.shape
    k2, n = b.shape
    assert k_dim == k2 and bias.shape == (1, n)
    tm = min(tm, m)
    tk = min(tk, k_dim)
    assert m % tm == 0 and k_dim % tk == 0
    grid = (m // tm, k_dim // tk)

    kernel = functools.partial(
        _matmul_bias_act_kernel,
        activation=activation,
        n_valid_cols=n if n_valid_cols is None else n_valid_cols)

    return pl.pallas_call(
        kernel,
        out_shape=jax.ShapeDtypeStruct((m, n), out_dtype),
        grid_spec=pltpu.PrefetchScalarGridSpec(
            num_scalar_prefetch=0,
            grid=grid,
            in_specs=[
                pl.BlockSpec((tm, tk), lambda i, k: (i, k)),   # A tile, streamed from HBM
                pl.BlockSpec((tk, n), lambda i, k: (k, 0)),    # B panel (n padded to 128)
                pl.BlockSpec((1, n), lambda i, k: (0, 0)),     # bias row
            ],
            out_specs=pl.BlockSpec((tm, n), lambda i, k: (i, 0)),
            scratch_shapes=[pltpu.VMEM((tm, n), jnp.float32)],
        ),
        compiler_params=pltpu.CompilerParams(
            dimension_semantics=("parallel", "arbitrary"),
            vmem_limit_bytes=32 * 1024 * 1024,
        ),
    )(a, b, bias)


def normalized_adjacency(edge_index, num_nodes):
    """Dense D^{-1/2} (A + I) D^{-1/2} from edge_index [2, E] (plain-JAX glue).

    Self-loops are .set (not added), so a 2.0 diagonal cannot appear even if
    edge_index already contains them.
    # TODO(synk): duplicate edges are deduplicated by .set (PyG scatter-adds them).
    """
    src, dst = edge_index[0], edge_index[1]
    adj = jnp.zeros((num_nodes, num_nodes), jnp.float32)
    adj = adj.at[dst, src].set(1.0)
    adj = adj.at[src, dst].set(1.0)            # treat graph as undirected (as before)
    diag = jnp.arange(num_nodes)
    adj = adj.at[diag, diag].set(1.0)          # self-loops (idempotent)
    deg = jnp.sum(adj, axis=1)
    d_inv_sqrt = jax.lax.rsqrt(jnp.maximum(deg, 1e-12))
    return d_inv_sqrt[:, None] * adj * d_inv_sqrt[None, :]


def gcn_forward(x, edge_index, params, *, tile=128):
    # For large graphs sweep tile in {256, 512} (v6e) / {256} (v7x, 64 MiB VMEM).
    n, f = x.shape
    h = params["w1"].shape[1]
    c = params["w2"].shape[1]

    n_p = _round_up(n, tile)
    f_p = _round_up(f, 128)
    h_p = _round_up(h, 128)
    c_p = _round_up(c, 128)

    # Lane-dense, zero-padded, bf16 operands for the MXU (f32 accumulation in-kernel).
    a_bf = _pad2d(normalized_adjacency(edge_index, n), n_p, n_p).astype(jnp.bfloat16)
    x_bf = _pad2d(x, n_p, f_p).astype(jnp.bfloat16)
    w1_bf = _pad2d(params["w1"], f_p, h_p).astype(jnp.bfloat16)
    w2_bf = _pad2d(params["w2"], h_p, c_p).astype(jnp.bfloat16)
    b1_p = _pad2d(params["b1"], 1, h_p)
    b2_p = _pad2d(params["b2"], 1, c_p)
    zeros_h = jnp.zeros((1, h_p), jnp.float32)
    zeros_c = jnp.zeros((1, c_p), jnp.float32)

    # 1) XW = X @ W1   (computed once; never recomputed inside the A-tile loops)
    xw = _tiled_matmul(x_bf, w1_bf, zeros_h, out_dtype=jnp.bfloat16,
                       tm=tile, tk=tile)
    # 2) H = relu(A_hat @ XW + b1)
    h_act = _tiled_matmul(a_bf, xw, b1_p, out_dtype=jnp.bfloat16,
                          activation="relu", tm=tile, tk=tile)
    # TODO(synk): F.dropout(p=0.5) omitted — module run in eval mode (training=False => identity).
    # 3) HW = H @ W2
    hw = _tiled_matmul(h_act, w2_bf, zeros_c, out_dtype=jnp.bfloat16,
                       tm=tile, tk=tile)
    # 4) OUT = log_softmax(A_hat @ HW + b2) over the real C classes
    out_p = _tiled_matmul(a_bf, hw, b2_p, out_dtype=jnp.float32,
                          activation="log_softmax", n_valid_cols=c,
                          tm=tile, tk=tile)
    return out_p[:n, :c]


def init_params(key, n_features, n_hidden, n_classes):
    k1, k2 = jax.random.split(key)
    lim1 = jnp.sqrt(6.0 / (n_features + n_hidden))
    lim2 = jnp.sqrt(6.0 / (n_hidden + n_classes))
    return {
        "w1": jax.random.uniform(k1, (n_features, n_hidden), jnp.float32, -lim1, lim1),
        "b1": jnp.zeros((1, n_hidden), jnp.float32),
        "w2": jax.random.uniform(k2, (n_hidden, n_classes), jnp.float32, -lim2, lim2),
        "b2": jnp.zeros((1, n_classes), jnp.float32),
    }


def gcn_reference(x, edge_index, params):
    """Pure-JAX reference with the same bf16 operand/intermediate casts as the kernel."""
    bf = lambda t: t.astype(jnp.bfloat16).astype(jnp.float32)
    a = bf(normalized_adjacency(edge_index, x.shape[0]))
    xw = bf(bf(x) @ bf(params["w1"]))
    h = bf(jnp.maximum(a @ xw + params["b1"], 0.0))
    hw = bf(h @ bf(params["w2"]))
    z = a @ hw + params["b2"]
    return jax.nn.log_softmax(z, axis=1)


if __name__ == "__main__":
    N_NODES, N_FEATURES, N_HIDDEN, N_CLASSES = 256, 64, 16, 4

    key = jax.random.PRNGKey(0)
    k_x, k_p = jax.random.split(key)

    x = jax.random.normal(k_x, (N_NODES, N_FEATURES), jnp.float32)
    # Simple ring graph (directed edges i -> i+1); normalization symmetrizes it.
    src = jnp.arange(N_NODES, dtype=jnp.int32)
    dst = (src + 1) % N_NODES
    edge_index = jnp.stack([src, dst], axis=0)       # [2, E]

    params = init_params(k_p, N_FEATURES, N_HIDDEN, N_CLASSES)

    out = jax.block_until_ready(gcn_forward(x, edge_index, params))

    assert out.shape == (N_NODES, N_CLASSES)
    assert bool(jnp.all(jnp.isfinite(out)))
    # rows of log_softmax should exp-sum to 1
    assert bool(jnp.allclose(jnp.sum(jnp.exp(out), axis=1), 1.0, atol=1e-3))
    ref = gcn_reference(x, edge_index, params)
    assert bool(jnp.allclose(out, ref, atol=5e-2)), float(jnp.max(jnp.abs(out - ref)))
    print("KERNEL_OK")
</pallas_src>

<mosaic_0001>
module attributes {stable_mosaic.version = 11 : i64} {
  func.func @_matmul_bias_act_kernel(%arg0: i32, %arg1: i32, %arg2: memref<128x128xbf16, #tpu.memory_space<vmem>>, %arg3: memref<128x128xbf16, #tpu.memory_space<vmem>>, %arg4: memref<1x128xf32, #tpu.memory_space<vmem>>, %arg5: memref<128x128xbf16, #tpu.memory_space<vmem>>, %arg6: memref<128x128xf32, #tpu.memory_space<vmem>>) attributes {dimension_semantics = [#tpu.dimension_semantics<parallel>, #tpu.dimension_semantics<arbitrary>], iteration_bounds = array<i64: 2, 1>, scalar_prefetch = 0 : i64, scratch_operands = 1 : i64, tpu.core_type = #tpu.core_type<tc>, window_params = [{transform_indices = @transform_0, window_bounds = array<i64: 128, 128>}, {transform_indices = @transform_1, window_bounds = array<i64: 128, 128>}, {pipeline_mode = #tpu.pipeline_mode<synchronous>, transform_indices = @transform_2, window_bounds = array<i64: 1, 128>}, {transform_indices = @transform_3, window_bounds = array<i64: 128, 128>}]} {
    %c0_i32 = arith.constant 0 : i32
    %0 = arith.cmpi eq, %arg1, %c0_i32 : i32
    %1 = arith.extui %0 : i1 to i32
    %c0_i32_0 = arith.constant 0 : i32
    %2 = arith.cmpi ne, %1, %c0_i32_0 : i32
    scf.if %2 {
      %cst_10 = arith.constant 0.000000e+00 : f32
      %12 = vector.broadcast %cst_10 : f32 to vector<128x128xf32>
      %c0_11 = arith.constant 0 : index
      %c0_12 = arith.constant 0 : index
      %13 = vector.load %arg6[%c0_11, %c0_12] : memref<128x128xf32, #tpu.memory_space<vmem>>, vector<128x128xf32>
      tpu.vector_store %arg6[%c0_11, %c0_12], %12 {strides = array<i32>} : memref<128x128xf32, #tpu.memory_space<vmem>>, vector<128x128xf32>,
    } else {
    }
    %c0 = arith.constant 0 : index
    %c0_1 = arith.constant 0 : index
    %3 = vector.load %arg6[%c0, %c0_1] : memref<128x128xf32, #tpu.memory_space<vmem>>, vector<128x128xf32>
    %c0_2 = arith.constant 0 : index
    %c0_3 = arith.constant 0 : index
    %4 = vector.load %arg2[%c0_2, %c0_3] : memref<128x128xbf16, #tpu.memory_space<vmem>>, vector<128x128xbf16>
    %c0_4 = arith.constant 0 : index
    %c0_5 = arith.constant 0 : index
    %5 = vector.load %arg3[%c0_4, %c0_5] : memref<128x128xbf16, #tpu.memory_space<vmem>>, vector<128x128xbf16>
    %cst = arith.constant dense<0.000000e+00> : vector<128x128xf32>
    %6 = tpu.matmul %4, %5, %cst {dimension_numbers = #tpu.dot_dimension_numbers<[1], [0], [0], [1], [0, 0, 1, 1], [], []>} : vector<128x128xbf16>, vector<128x128xbf16>, vector<128x128xf32> -> vector<128x128xf32>
    %7 = arith.addf %3, %6 : vector<128x128xf32>
    %c0_6 = arith.constant 0 : index
    %c0_7 = arith.constant 0 : index
    %8 = vector.load %arg6[%c0_6, %c0_7] : memref<128x128xf32, #tpu.memory_space<vmem>>, vector<128x128xf32>
    tpu.vector_store %arg6[%c0_6, %c0_7], %7 {strides = array<i32>} : memref<128x128xf32, #tpu.memory_space<vmem>>, vector<128x128xf32>,
    %c0_i32_8 = arith.constant 0 : i32
    %9 = arith.cmpi eq, %arg1, %c0_i32_8 : i32
    %10 = arith.extui %9 : i1 to i32
    %c0_i32_9 = arith.constant 0 : i32
    %11 = arith.cmpi ne, %10, %c0_i32_9 : i32
    scf.if %11 {
      %c0_10 = arith.constant 0 : index
      %c0_11 = arith.constant 0 : index
      %12 = vector.load %arg6[%c0_10, %c0_11] : memref<128x128xf32, #tpu.memory_space<vmem>>, vector<128x128xf32>
      %c0_12 = arith.constant 0 : index
      %c0_13 = arith.constant 0 : index
      %13 = vector.load %arg4[%c0_12, %c0_13] : memref<1x128xf32, #tpu.memory_space<vmem>>, vector<1x128xf32>
      %14 = vector.broadcast %13 : vector<1x128xf32> to vector<128x128xf32>
      %15 = arith.addf %12, %14 : vector<128x128xf32>
      %16 = arith.truncf %15 : vector<128x128xf32> to vector<128x128xbf16>
      %c0_14 = arith.constant 0 : index
      %c0_15 = arith.constant 0 : index
      %17 = vector.load %arg5[%c0_14, %c0_15] : memref<128x128xbf16, #tpu.memory_space<vmem>>, vector<128x128xbf16>
      tpu.vector_store %arg5[%c0_14, %c0_15], %16 {strides = array<i32>} : memref<128x128xbf16, #tpu.memory_space<vmem>>, vector<128x128xbf16>,
    } else {
    }
    return
  }
  func.func @transform_0(%arg0: i32, %arg1: i32) -> (i32, i32) {
    %c0_i32 = arith.constant 0 : i32
    return %arg0, %arg1 : i32, i32
  }
  func.func @transform_1(%arg0: i32, %arg1: i32) -> (i32, i32) {
    %c0_i32 = arith.constant 0 : i32
    %c0_i32_0 = arith.constant 0 : i32
    return %arg1, %c0_i32 : i32, i32
  }
  func.func @transform_2(%arg0: i32, %arg1: i32) -> (i32, i32) {
    %c0_i32 = arith.constant 0 : i32
    %c0_i32_0 = arith.constant 0 : i32
    %c0_i32_1 = arith.constant 0 : i32
    return %c0_i32, %c0_i32_0 : i32, i32
  }
  func.func @transform_3(%arg0: i32, %arg1: i32) -> (i32, i32) {
    %c0_i32 = arith.constant 0 : i32
    %c0_i32_0 = arith.constant 0 : i32
    return %arg0, %c0_i32 : i32, i32
  }
}

</mosaic_0001>

<bundles_post_ra>
// kernel: tpu_custom_call.1
= control target key start
LH: loop header
LB: loop body
LE: loop exit
PB: predicated region body
PF: predicated region fallthrough
CT: control target
= control target key end

     0   :  { %8 = vsyncpa [#allocation4], 0  ;;  %s1409_s0 = inlined_call_operand.hbm [shape: bf16[256,128], index: 0, kind: input, shape index: {}]   ;;  %s1410_s1 = inlined_call_operand.hbm [shape: bf16[128,128], index: 1, kind: input, shape index: {}]   ;;  %s1411_s2 = inlined_call_operand.vmem [shape: f32[1,128], index: 2, kind: input, shape index: {}]   ;;  %s1412_s3 = inlined_call_operand.hbm [shape: bf16[256,128], index: 3, kind: output, shape index: {}]  }
   0x1   :  { %10 = vsyncpa [#allocation4 + $0x1], 0 }
   0x2   :  { %11 = vsyncpa [#allocation7], 0 }
   0x3   :  { %12 = vsyncpa [#allocation5], 0 }
   0x4   :  { %14 = vsyncpa [#allocation5 + $0x1], 0  ;;  %s1194_s12 = smov 0   ;;  %s1196_s13 = smov 0  }
   0x5   :  { %s1198_s14 = smov 0   ;;  %s1200_s15 = smov 0  }
   0x6   :  { %s1202_s16 = smov 0   ;;  %s1204_s17 = smov 0  }
   0x7 LB: > { %s755_s18 = sadd.s32 4294967295, %s1165_s17   ;;  %s756_s19 = sadd.s32 4294967294, %s1165_s17   ;;  %s1165_s17 = sphi %s1204_s17, %s20_s17   ;;  %s1161_s16 = sphi %s1202_s16, %s1434_s16   ;;  %s1157_s15 = sphi %s1200_s15, %s1433_s15   ;;  %s1153_s14 = sphi %s1198_s14, %s1432_s14   ;;  %s1149_s13 = sphi %s1196_s13, %s1431_s13   ;;  %s1145_s12 = sphi %s1194_s12, %s1430_s12  }
   0x8   : > { %p54_p0 = scmp.ne.s32.totalorder %s1149_s13, %s1145_s12  ;;  %p1228_p1 = scmp.eq.s32.totalorder %s755_s18, 0 }
   0x9   : > { %p1232_p2 = scmp.eq.s32.totalorder %s755_s18, 1  ;;  %p131_p3 = scmp.eq.s32.totalorder %s756_s19, 1 }
   0xa   : > { %p1238_p4 = por %p1228_p1, %p54_p0  ;;  %p757_p5 = scmp.ge.s32.totalorder %s1165_s17, 1 }
   0xb   : > { %p1243_p6 = por %p131_p3, %p54_p0  ;;  %p138_p7 = scmp.lt.s32.totalorder %s1165_s17, 3 }
   0xc   : > { %s1418_s22 = scalar_select %p1238_p4, 1, 0 }
   0xd   : > { %s1419_s23 = scalar_select %p1243_p6, 1, 0 }
   0xe   : > { %p1248_p8 = pnand %p757_p5, %p138_p7  ;;  %s1167_s25 = smov [#allocation6]  }
   0xf   : > { %s153_s26 = sshll.u32 %s1167_s25, 4  ;;  %s32_s28 = sadd.s32 1, %s1161_s16  ;;  %s154_s26 = int_to_ptr.vmem [resolvable:$true] %s153_s26 }
  0x10   : > { %p942_p9 = pneg %p1248_p8  ;;  %s1038_s29 = scalar_lea.vmem %s154_s26, 1024 }
  0x11   : > { %p1039_p13 = scmp.ne.s32.totalorder %s154_s26, %s1038_s29  ;;  %p1046_p5 = scmp.lt.s32.totalorder %s154_s26, %s154_s26 }
  0x12   : > { %p1257_p11 = pnand %p942_p9, %p1228_p1  ;;  %p1047_p7 = scmp.lt.s32.totalorder %s1038_s29, %s1038_s29 }
  0x14   : > { %p1029_p12 = pneg %p1257_p11  ;;  %p1048_p6 = por %p1047_p7, %p1046_p5 }
  0x16   : > { %p1041_p0 = pnand %p1039_p13, %p1029_p12 }
  0x18   : > { %p1042_p3 = pneg %p1041_p0 }
  0x1a   : > { %p1049_p4 = pnand %p1048_p6, %p1042_p3 }
  0x1c   : > { %1052 = shalt.err (!%p1049_p4)
}
  0x1d   : > { %s1414_s30 = smov 64   ;;  %s1415_s4 = smov 4  }
  0x1e   : > { %945 = dma.hbm_to_vmem [thread:$0]  (!%p1257_p11), %s1410_s1, 1024, %s154_s26, [#allocation7], %s1414_s30, %s1414_s30, %s1415_s4  }
  0x1f   : > { %p34_p4 = scmp.ge.s32.totalorder %s32_s28, 2  ;;  %s41_s7 = sadd.s32 1, %s1153_s14 }
  0x20   : > { %p48_p6 = scmp.ne.s32.totalorder %s1153_s14, %s1149_s13  ;;  %p49_p9 = scmp.eq.s32.totalorder %s1165_s17, 0 }
  0x21   : > { %s1436_s28 = smov (%p34_p4, %s32_s28), 0  ;;  %p955_p0 = scmp.lt.s32.totalorder %s1165_s17, 2 }
  0x22   : > { %p1278_p12 = por %p49_p9, %p48_p6  ;;  %p1284_p13 = por %p1232_p2, %p48_p6 }
  0x23   : > { %s36_s10 = ssub.s32 %s1161_s16, %s1436_s28  ;;  %s170_s11 = sand.u32 1, %s1153_s14  }
  0x24   : > { %p39_p11 = scmp.eq.s32.totalorder %s36_s10, 0  ;;  %s760_s18 = sshll.u32 %s170_s11, 6 }
  0x25   : > { %s805_s25 = sshll.u32 %s1161_s16, 10  ;;  %s174_s5 = scalar_lea.vmem [#allocation3], %s760_s18 }
  0x26   : > { %s1293_s19 = scalar_select %p39_p11, %s1153_s14, %s41_s7  }
  0x27   : > { %s181_s29 = scalar_lea.hbm %s1409_s0, %s805_s25  ;;  %s182_s6 = sshll.u32 %s174_s5, 4  ;;  %s183_s6 = int_to_ptr.vmem [resolvable:$true] %s182_s6 }
  0x28   : > { %p1301_p2 = pnand %p955_p0, %p1278_p12  ;;  %s171_s30 = scalar_lea.sflag [#allocation4], %s170_s11 }
  0x29   : > { %s1066_s10 = scalar_lea.vmem %s183_s6, 1024  ;;  %s1170_s7 = smov [#allocation3]  }
  0x2a   : > { %p1055_p3 = pneg %p1301_p2  ;;  %p1067_p5 = scmp.ne.s32.totalorder %s183_s6, %s1066_s10 }
  0x2b   : > { %s1071_s4 = sshll.u32 %s1170_s7, 4  ;;  %s1072_s4 = int_to_ptr.vmem [resolvable:$false] %s1071_s4 }
  0x2c   : > { %p1069_p7 = pnand %p1067_p5, %p1055_p3  ;;  %s1073_s25 = scalar_lea.vmem %s1072_s4, 2048 }
  0x2d   : > { %p1074_p6 = scmp.lt.s32.totalorder %s183_s6, %s1072_s4  ;;  %p1075_p9 = scmp.lt.s32.totalorder %s1073_s25, %s1066_s10 }
  0x2e   : > { %p1070_p4 = pneg %p1069_p7 }
  0x2f   : > { %p1076_p11 = por %p1075_p9, %p1074_p6 }
  0x31   : > { %p1077_p10 = pnand %p1076_p11, %p1070_p4 }
  0x33   : > { %1080 = shalt.err (!%p1077_p10)
}
  0x34   : > { %s1425_s8 = smov 4   ;;  %s1426_s18 = smov 64  }
  0x35   : > { %949 = dma.hbm_to_vmem [thread:$0]  (!%p1301_p2), %s181_s29, 1024, %s183_s6, %s171_s30, %s1426_s18, %s1426_s18, %s1425_s8  }
  0x36   : > { %194 = sbr.rel (%p1248_p8) target bundleno = 320 (0x140), region = 32  ;;  %s1315_s11 = sand.u32 (!%p1248_p8), 1, %s1149_s13  }
  0x37   : > { %s764_s4 = sshll.u32 (!%p1248_p8), %s1315_s11, 6  ;;  %s197_s26 = scalar_lea.sflag (!%p1248_p8), [#allocation4], %s1315_s11 }
  0x38   : > { %s1321_s27 = scalar_lea.vmem (!%p1248_p8), [#allocation3], %s764_s4  ;;  %p1427_p10 = scmp.ne.s32.totalorder (!%p1248_p8), %s1418_s22, 0 }
  0x3b   : > { %1132 = dma.done.wait (%p1427_p10), %s197_s26, 1024  }
  0x3c   : > { %1134 = vsyncadd (%p1427_p10), %s197_s26, 4294966272 }
  0x3d   : > { %1136 = dma.done.wait (%p1228_p1), [#allocation7], 1024  }
  0x3e   : > { %1138 = vsyncadd (%p1228_p1), [#allocation7], 4294966272  ;;  %v1011_v0 = vld [vmem:[#allocation6 + $0x38] sm:$0xff]   ;;  %v1012_v1 = vld [vmem:[#allocation6 + $0x30] sm:$0xff]   ;;  %s1344_s24 = scalar_lea.vmem [#allocation8], %s764_s4  ;;  %s822_s29 = sshll.u32 %s1157_s15, 10 }
  0x3f   : > { %886 = vmatprep.subr.bf16.mxu0 %v1011_v0  ;;  %918 = vmatprep.subr.bf16.mxu1 %v1011_v0  ;;  %v1013_v2 = vld [vmem:[#allocation6 + $0x28] sm:$0xff]   ;;  %v1014_v3 = vld [vmem:[#allocation6 + $0x20] sm:$0xff]   ;;  %v1015_v6 = vld [vmem:[#allocation6 + $0x18] sm:$0xff]   ;;  %s660_s30 = sshll.u32 %s1344_s24, 4  ;;  %s1357_s21 = scalar_lea.hbm %s1412_s3, %s822_s29  ;;  %s1352_s30 = int_to_ptr.vmem [resolvable:$true] %s660_s30 }
  0x40   : > { %887 = vmatpush3.bf16.msra.mxu0 %v1011_v0  ;;  %926 = vmatpush3.bf16.msra.mxu1 %v1011_v0  ;;  %v1019_v4 = vld [vmem:[%s1321_s27] sm:$0xff]   ;;  %v1016_v7 = vld [vmem:[#allocation6 + $0x10] sm:$0xff]   ;;  %v1017_v8 = vld [vmem:[#allocation6 + $0x8] sm:$0xff]   ;;  %s647_s15 = scalar_lea.sflag [#allocation5], %s1315_s11  ;;  %s1081_s10 = scalar_lea.vmem %s1352_s30, 1024 }
  0x41   : > { %888 = vmatprep.subr.bf16.mxu0 %v1012_v1  ;;  %919 = vmatprep.subr.bf16.mxu1 %v1012_v1  ;;  %v1020_v5 = vld [vmem:[%s1321_s27 + $0x20] sm:$0xff]   ;;  %v1021_v10 = vld [vmem:[%s1321_s27 + $0x8] sm:$0xff]   ;;  %v1023_v12 = vld [vmem:[%s1321_s27 + $0x10] sm:$0xff]   ;;  %p1082_p1 = scmp.ne.s32.totalorder %s1352_s30, %s1081_s10  ;;  %s1171_s7 = smov [#allocation8]  }
  0x42   : > { %902 = vmatprep.mubr.bf16.mxu0 %v1019_v4  ;;  %910 = vmatprep.mubr.bf16.mxu1 %v1020_v5  ;;  %v1018_v9 = vld [vmem:[#allocation6] sm:$0xff]   ;;  %v1022_v11 = vld [vmem:[%s1321_s27 + $0x28] sm:$0xff]   ;;  %v1024_v13 = vld [vmem:[%s1321_s27 + $0x30] sm:$0xff]   ;;  %s1085_s25 = sshll.u32 %s1171_s7, 4  ;;  %s1086_s25 = int_to_ptr.vmem [resolvable:$false] %s1085_s25 }
  0x43   : > { %v1025_v14 = vld [vmem:[%s1321_s27 + $0x18] sm:$0xff]   ;;  %v783_v18 = vld [vmem:[%s1411_s2] ss:$0 sm:$0xff]  ;;  %p1083_p8 = pnand %p1082_p1, %p1284_p13  ;;  %s1087_s8 = scalar_lea.vmem %s1086_s25, 2048 }
  0x44   : > { %889 = vmatpush3.bf16.msra.mxu0 %v1012_v1  ;;  %927 = vmatpush3.bf16.msra.mxu1 %v1012_v1  ;;  %v1026_v15 = vld [vmem:[%s1321_s27 + $0x38] sm:$0xff]   ;;  %p1088_p0 = scmp.lt.s32.totalorder %s1352_s30, %s1086_s25  ;;  %p1089_p2 = scmp.lt.s32.totalorder %s1087_s8, %s1081_s10 }
  0x45   : > { %890 = vmatprep.subr.bf16.mxu0 %v1013_v2  ;;  %920 = vmatprep.subr.bf16.mxu1 %v1013_v2  ;;  %p1084_p12 = pneg %p1083_p8 }
  0x46   : > { %p1090_p3 = por %p1089_p2, %p1088_p0 }
  0x48   : > { %891 = vmatpush3.bf16.msra.mxu0 %v1013_v2  ;;  %928 = vmatpush3.bf16.msra.mxu1 %v1013_v2  ;;  %p1091_p5 = pnand %p1090_p3, %p1084_p12 }
  0x49   : > { %892 = vmatprep.subr.bf16.mxu0 %v1014_v3  ;;  %921 = vmatprep.subr.bf16.mxu1 %v1014_v3 }
  0x4c   : > { %893 = vmatpush3.bf16.msra.mxu0 %v1014_v3  ;;  %929 = vmatpush3.bf16.msra.mxu1 %v1014_v3 }
  0x4d   : > { %894 = vmatprep.subr.bf16.mxu0 %v1015_v6  ;;  %922 = vmatprep.subr.bf16.mxu1 %v1015_v6 }
  0x50   : > { %895 = vmatpush3.bf16.msra.mxu0 %v1015_v6  ;;  %930 = vmatpush3.bf16.msra.mxu1 %v1015_v6 }
  0x51   : > { %896 = vmatprep.subr.bf16.mxu0 %v1016_v7  ;;  %923 = vmatprep.subr.bf16.mxu1 %v1016_v7 }
  0x54   : > { %897 = vmatpush3.bf16.msra.mxu0 %v1016_v7  ;;  %931 = vmatpush3.bf16.msra.mxu1 %v1016_v7 }
  0x55   : > { %898 = vmatprep.subr.bf16.mxu0 %v1017_v8  ;;  %924 = vmatprep.subr.bf16.mxu1 %v1017_v8 }
  0x58   : > { %899 = vmatpush3.bf16.msra.mxu0 %v1017_v8  ;;  %932 = vmatpush3.bf16.msra.mxu1 %v1017_v8 }
  0x59   : > { %900 = vmatprep.subr.bf16.mxu0 %v1018_v9  ;;  %925 = vmatprep.subr.bf16.mxu1 %v1018_v9 }
  0x5c   : > { %901 = vmatpush3.bf16.msra.mxu0 %v1018_v9  ;;  %933 = vmatpush3.bf16.msra.mxu1 %v1018_v9 }
  0x5f   : > { %903 = vmatmul.mubr.bf16.vlgmr.msra.gmra.mxu0 %v1021_v10  ;;  %911 = vmatmul.mubr.bf16.vlgmr.msra.gmra.mxu1 %v1022_v11 }
  0x60   : > { %906 = vmatprep.mubr.bf16.mxu0 %v1023_v12  ;;  %914 = vmatprep.mubr.bf16.mxu1 %v1024_v13 }
  0x67   : > { %907 = vmatmul.mubr.bf16.gmra.mxu0 %v1025_v14  ;;  %915 = vmatmul.mubr.bf16.gmra.mxu1 %v1026_v15 }
 0x11f   : > { %v904_v16 = vpop.f32.mrf.mxu0  ;;  %v912_v17 = vpop.f32.mrf.mxu1 }
 0x120   : > { %v552_v23 = vadd.f32 %v904_v16, %v783_v18  ;;  %v560_v24 = vadd.f32 %v912_v17, %v783_v18 }
 0x121   : > { %v429_v19 = vpop.f32.mrf.mxu0  ;;  %v461_v20 = vpop.f32.mrf.mxu1 }
 0x122   : > { %v550_v27 = vadd.f32 %v783_v18, %v429_v19  ;;  %v558_v28 = vadd.f32 %v783_v18, %v461_v20 }
 0x123   : > { %v905_v21 = vpop.f32.mrf.mxu0  ;;  %v913_v22 = vpop.f32.mrf.mxu1 }
 0x124   : > { %v553_v25 = vadd.f32 %v905_v21, %v783_v18  ;;  %v561_v26 = vadd.f32 %v913_v22, %v783_v18 }
 0x125   : > { %v432_v29 = vpop.f32.mrf.mxu0  ;;  %v464_v30 = vpop.f32.mrf.mxu1 }
 0x126   : > { %v831_v31 = vpack.c.bf16 %v553_v25, %v552_v23  ;;  %v851_v32 = vpack.c.bf16 %v561_v26, %v560_v24  ;;  %v551_v33 = vadd.f32 %v783_v18, %v432_v29  ;;  %v559_v34 = vadd.f32 %v783_v18, %v464_v30 }
 0x127   : > { %v908_v35 = vpop.f32.mrf.mxu0  ;;  %v916_v36 = vpop.f32.mrf.mxu1 }
 0x128   : > { %863 = vst [vmem:[%s1344_s24 + $0x8] sm:$0xff] %v831_v31   ;;  %867 = vst [vmem:[%s1344_s24 + $0x28] sm:$0xff] %v851_v32   ;;  %v826_v37 = vpack.c.bf16 %v551_v33, %v550_v27  ;;  %v846_v38 = vpack.c.bf16 %v559_v34, %v558_v28  ;;  %v556_v43 = vadd.f32 %v908_v35, %v783_v18 }
 0x129   : > { %v445_v39 = vpop.f32.mrf.mxu0  ;;  %v477_v40 = vpop.f32.mrf.mxu1  ;;  %v564_v44 = vadd.f32 %v916_v36, %v783_v18 }
 0x12a   : > { %827 = vst [vmem:[%s1344_s24] sm:$0xff] %v826_v37   ;;  %866 = vst [vmem:[%s1344_s24 + $0x20] sm:$0xff] %v846_v38   ;;  %v554_v47 = vadd.f32 %v783_v18, %v445_v39  ;;  %v562_v48 = vadd.f32 %v783_v18, %v477_v40 }
 0x12b   : > { %v909_v41 = vpop.f32.mrf.mxu0  ;;  %v917_v42 = vpop.f32.mrf.mxu1 }
 0x12c   : > { %v557_v45 = vadd.f32 %v909_v41, %v783_v18  ;;  %v565_v46 = vadd.f32 %v917_v42, %v783_v18 }
 0x12d   : > { %v448_v49 = vpop.f32.mrf.mxu0  ;;  %v480_v50 = vpop.f32.mrf.mxu1 }
 0x12e   : > { %v841_v51 = vpack.c.bf16 %v557_v45, %v556_v43  ;;  %v861_v52 = vpack.c.bf16 %v565_v46, %v564_v44  ;;  %v555_v53 = vadd.f32 %v783_v18, %v448_v49  ;;  %v563_v54 = vadd.f32 %v783_v18, %v480_v50 }
 0x130   : > { %865 = vst [vmem:[%s1344_s24 + $0x18] sm:$0xff] %v841_v51   ;;  %869 = vst [vmem:[%s1344_s24 + $0x38] sm:$0xff] %v861_v52   ;;  %v836_v55 = vpack.c.bf16 %v555_v53, %v554_v47  ;;  %v856_v56 = vpack.c.bf16 %v563_v54, %v562_v48 }
 0x132   : > { %864 = vst [vmem:[%s1344_s24 + $0x10] sm:$0xff] %v836_v55   ;;  %868 = vst [vmem:[%s1344_s24 + $0x30] sm:$0xff] %v856_v56  }
 0x133   : > { %1094 = shalt.err (!%p1091_p5)
}
 0x134   : > { %s1095_s18 = scalar_lea.hbm %s1357_s21, 1024  ;;  %s1099_s27 = scalar_lea.hbm %s1412_s3, 2048 }
 0x135   : > { %p1096_p7 = scmp.ne.s32.totalorder %s1357_s21, %s1095_s18  ;;  %p1100_p9 = scmp.lt.s32.totalorder %s1357_s21, %s1412_s3 }
 0x136   : > { %p1101_p11 = scmp.lt.s32.totalorder %s1099_s27, %s1095_s18 }
 0x137   : > { %p1097_p4 = pnand %p1096_p7, %p1284_p13 }
 0x138   : > { %p1102_p10 = por %p1101_p11, %p1100_p9 }
 0x139   : > { %p1098_p6 = pneg %p1097_p4 }
 0x13b   : > { %p1103_p1 = pnand %p1102_p10, %p1098_p6 }
 0x13d   : > { %1106 = shalt.err (!%p1103_p1)
}
 0x13e   : > { %s1172_s24 = smov 64   ;;  %s1173_s29 = smov 4  }
 0x13f   : > { %940 = dma.vmem_to_hbm [thread:$0]  (%p1284_p13), %s1352_s30, 1024, %s1357_s21, %s647_s15, %s1172_s24, %s1172_s24, %s1173_s29  }
 0x140 PF: > { %s675_s5 = sand.u32 1, %s1145_s12   ;;  %p1428_p8 = scmp.ne.s32.totalorder %s1419_s23, 0 }
 0x141   : > { %p1429_p12 = scmp.ge.s32.totalorder %s1165_s17, 2  ;;  %s676_s6 = scalar_lea.sflag [#allocation5], %s675_s5 }
 0x143   : > { %p951_p0 = pnand %p1429_p12, %p1428_p8 }
 0x145   : > { %p952_p2 = pneg %p951_p0 }
 0x147   : > { %1140 = dma.done.wait (%p952_p2), %s676_s6, 1024  }
 0x148   : > { %1142 = vsyncadd (%p952_p2), %s676_s6, 4294966272  ;;  %s20_s17 = sadd.s32 1, %s1165_s17   ;;  %s1430_s12 = smov %s1149_s13 }
 0x149   : > { %p17_p3 = scmp.ge.s32.totalorder %s20_s17, 4   ;;  %s1431_s13 = smov %s1153_s14 }
 0x14a   : > { %s1432_s14 = smov %s1293_s19  ;;  %s1433_s15 = smov %s1161_s16 }
 0x14b   : > { %s1434_s16 = smov %s1436_s28  ;;  %19 = sbr.rel (!%p17_p3) target bundleno = 7 (0x7), region = 90 }
 0x150   :  { %681 = vsyncpa [#allocation4], 1 }
 0x151   :  { %683 = vsyncpa [#allocation4 + $0x1], 1 }
 0x152   :  { %684 = vsyncpa [#allocation7], 1 }
 0x153   :  { %685 = vsyncpa [#allocation5], 1 }
 0x154   :  { %687 = vsyncpa [#allocation5 + $0x1], 1 }

</bundles_post_ra>
